<compile_context>
chip_gen: v6e
topology: v6e:2x2x1
jax: 0.10.0
libtpu: 0.0.40
codegen_flags: <defaults>
</compile_context>

<pallas_src>
import math

import jax
import jax.numpy as jnp
from jax import lax
from jax.experimental import pallas as pl
from jax.experimental.pallas import tpu as pltpu


# ---------------------------------------------------------------------------
# Kernel 1: fused, pre-scaled QKV projection (each row of x projected once).
# ---------------------------------------------------------------------------
def qkv_proj_kernel(x_ref, w_ref, qkv_ref):
    # x_ref:   (1, tr, d_in)    bf16
    # w_ref:   (d_in, 3*d_out)  bf16  (Q columns pre-scaled by 1/sqrt(head_dim))
    # qkv_ref: (1, tr, 3*d_out) bf16
    x = x_ref[0]
    qkv = jnp.dot(x, w_ref[...], preferred_element_type=jnp.float32)
    qkv_ref[0] = qkv.astype(qkv_ref.dtype)


# ---------------------------------------------------------------------------
# Kernel 2: causal attention (all heads batched) + output projection.
# ---------------------------------------------------------------------------
def attn_kernel(q_ref, k_ref, v_ref, wo_ref, bo_ref, out_ref):
    # q_ref:   (1, H, tq, hd) bf16  (already scaled by 1/sqrt(hd))
    # k_ref:   (1, H, T,  hd) bf16
    # v_ref:   (1, H, T,  hd) bf16
    # wo_ref:  (H, hd, d_out) bf16
    # bo_ref:  (1, d_out)     f32
    # out_ref: (1, tq, d_out)
    H = k_ref.shape[1]
    T = k_ref.shape[2]
    tq = q_ref.shape[2]
    d_out = out_ref.shape[2]
    qi = pl.program_id(1)

    q = q_ref[0]                                            # (H, tq, hd)
    k = k_ref[0]                                            # (H, T,  hd)
    v = v_ref[0]                                            # (H, T,  hd)

    # Additive causal-mask bias, shared by all heads: 0 where col <= row,
    # -1e30 where col > row (finite so f32 exp stays well-behaved).
    q_start = qi * tq
    row = q_start + lax.broadcasted_iota(jnp.int32, (tq, T), 0)
    col = lax.broadcasted_iota(jnp.int32, (tq, T), 1)
    neg_bias = jnp.where(col > row, jnp.float32(-1e30), jnp.float32(0.0))

    # Batched-over-heads QK^T (contraction over hd, no explicit transposes).
    scores = jnp.einsum("hqd,hkd->hqk", q, k,
                        preferred_element_type=jnp.float32)  # (H, tq, T) f32
    scores = scores + neg_bias[None, :, :]

    # Softmax along keys (f32 on the VPU; reciprocal on the EUP).
    m = jnp.max(scores, axis=-1, keepdims=True)
    e = jnp.exp(scores - m)
    s = jnp.sum(e, axis=-1, keepdims=True)
    p = (e * pl.reciprocal(s, approx=True)).astype(jnp.bfloat16)

    # Batched-over-heads P @ V.
    ctx = jnp.einsum("hqk,hkd->hqd", p, v,
                     preferred_element_type=jnp.float32)     # (H, tq, hd) f32

    # Output projection as a per-head accumulation into ONE full-width
    # (tq, d_out) f32 value: only leading-dim indexing (no lane slicing),
    # one lane-dense store at the end.
    acc = jnp.zeros((tq, d_out), jnp.float32)
    for h in range(H):
        acc = acc + jnp.dot(ctx[h].astype(jnp.bfloat16), wo_ref[h],
                            preferred_element_type=jnp.float32)
    out_ref[0] = (acc + bo_ref[...]).astype(out_ref.dtype)


def _pick_q_tile(T, B):
    """Query-tile size: bounded for long T, >=2 grid steps when B == 1."""
    if T >= 512 and T % 256 == 0:
        return 256
    if B == 1 and T % 16 == 0:
        return T // 2
    return T


def multi_head_attention(x, wq, wk, wv, wo, bo, *, num_heads):
    """x: (B, T, d_in); wq/wk/wv: (d_in, d_out); wo: (d_out, d_out); bo: (d_out,)."""
    B, T, d_in = x.shape
    d_out = wq.shape[1]
    assert d_out % num_heads == 0, "d_out must be divisible by num_heads"
    head_dim = d_out // num_heads

    tq = _pick_q_tile(T, B)
    n_qt = T // tq

    # bf16 operands for the MXU; accumulation stays f32 inside the kernels.
    scale = 1.0 / math.sqrt(head_dim)
    x_bf = x.astype(jnp.bfloat16)
    # Fold 1/sqrt(head_dim) into the Q weight columns (trace-time, free).
    w_qkv = jnp.concatenate([wq * scale, wk, wv], axis=1).astype(jnp.bfloat16)
    wo_h = wo.reshape(num_heads, head_dim, d_out).astype(jnp.bfloat16)
    bo2 = bo.reshape(1, d_out).astype(jnp.float32)

    # ---------------- pass 1: QKV projection ----------------
    proj_cost = pl.CostEstimate(
        flops=2 * B * T * d_in * 3 * d_out,
        transcendentals=0,
        bytes_accessed=2 * (B * T * d_in + d_in * 3 * d_out + B * T * 3 * d_out))

    qkv = pl.pallas_call(
        qkv_proj_kernel,
        out_shape=jax.ShapeDtypeStruct((B, T, 3 * d_out), jnp.bfloat16),
        grid_spec=pltpu.PrefetchScalarGridSpec(
            num_scalar_prefetch=0,
            grid=(B, n_qt),
            in_specs=[
                pl.BlockSpec((1, tq, d_in), lambda b, ri: (b, ri, 0)),
                pl.BlockSpec((d_in, 3 * d_out), lambda b, ri: (0, 0)),
            ],
            out_specs=pl.BlockSpec((1, tq, 3 * d_out), lambda b, ri: (b, ri, 0)),
        ),
        compiler_params=pltpu.CompilerParams(
            dimension_semantics=("parallel", "parallel")),
        cost_estimate=proj_cost,
    )(x_bf, w_qkv)

    # Head-major layout (pure XLA layout plumbing, done once) so the attention
    # kernel needs no in-kernel reshapes / transposes / lane-crossing slices.
    qkv = qkv.reshape(B, T, 3, num_heads, head_dim).transpose(2, 0, 3, 1, 4)
    q, k, v = qkv[0], qkv[1], qkv[2]            # each (B, H, T, hd) bf16

    # ---------------- pass 2: attention + output projection ----------------
    # Rough per-step VMEM estimate (lane-padded) to decide whether to raise
    # the scoped-VMEM ceiling above the per-generation defaults.
    lane = 128
    hd_p, t_p, d_p = max(head_dim, lane), max(T, lane), max(d_out, lane)
    est = (2 * 2 * num_heads * T * hd_p * 2          # K + V blocks (double-buffered)
           + 2 * num_heads * tq * hd_p * 2           # Q block
           + 2 * num_heads * tq * t_p * 4            # scores + exp (f32)
           + num_heads * tq * hd_p * 4               # ctx (f32)
           + 2 * tq * d_p * 4                        # output block
           + 2 * num_heads * head_dim * d_p * 2)     # wo
    vmem_limit = None
    if est > 24 * 1024 * 1024:
        # v5e scoped default is 16 MiB, v6e/v7x 32 MiB; cap at 64 MiB so the
        # request also fits v7x's physical VMEM.
        vmem_limit = int(min(est + 16 * 1024 * 1024, 64 * 1024 * 1024))

    attn_cost = pl.CostEstimate(
        flops=4 * B * T * T * d_out + 2 * B * T * d_out * d_out,
        transcendentals=B * num_heads * T * T,
        bytes_accessed=(2 * (3 * B * T * d_out + d_out * d_out + d_out)
                        + B * T * d_out * x.dtype.itemsize))

    out = pl.pallas_call(
        attn_kernel,
        out_shape=jax.ShapeDtypeStruct((B, T, d_out), x.dtype),
        grid_spec=pltpu.PrefetchScalarGridSpec(
            num_scalar_prefetch=0,
            grid=(B, n_qt),
            in_specs=[
                pl.BlockSpec((1, num_heads, tq, head_dim),
                             lambda b, qi: (b, 0, qi, 0)),
                # K/V block index depends only on b -> fetched once per batch
                # element and reused across all query tiles.
                pl.BlockSpec((1, num_heads, T, head_dim),
                             lambda b, qi: (b, 0, 0, 0)),
                pl.BlockSpec((1, num_heads, T, head_dim),
                             lambda b, qi: (b, 0, 0, 0)),
                pl.BlockSpec((num_heads, head_dim, d_out),
                             lambda b, qi: (0, 0, 0)),
                pl.BlockSpec((1, d_out), lambda b, qi: (0, 0)),
            ],
            out_specs=pl.BlockSpec((1, tq, d_out), lambda b, qi: (b, qi, 0)),
        ),
        compiler_params=pltpu.CompilerParams(
            dimension_semantics=("parallel", "parallel"),
            vmem_limit_bytes=vmem_limit),
        cost_estimate=attn_cost,
    )(q, k, v, wo_h, bo2)
    return out


def reference_mha(x, wq, wk, wv, wo, bo, *, num_heads):
    """Pure-JAX f32 reference mirroring the PyTorch forward."""
    B, T, d_in = x.shape
    d_out = wq.shape[1]
    hd = d_out // num_heads
    q = (x @ wq).reshape(B, T, num_heads, hd).transpose(0, 2, 1, 3)
    k = (x @ wk).reshape(B, T, num_heads, hd).transpose(0, 2, 1, 3)
    v = (x @ wv).reshape(B, T, num_heads, hd).transpose(0, 2, 1, 3)
    scores = jnp.einsum("bhqd,bhkd->bhqk", q, k)
    mask = jnp.triu(jnp.ones((T, T), dtype=bool), k=1)
    scores = jnp.where(mask, -jnp.inf, scores)
    w = jax.nn.softmax(scores / math.sqrt(hd), axis=-1)
    ctx = jnp.einsum("bhqk,bhkd->bhqd", w, v).transpose(0, 2, 1, 3).reshape(B, T, d_out)
    return ctx @ wo + bo


def _run_case(key, B, T, d_in, d_out, num_heads):
    kx, kq, kk, kv, ko, kb = jax.random.split(key, 6)
    x = jax.random.normal(kx, (B, T, d_in), dtype=jnp.float32)
    wq = jax.random.normal(kq, (d_in, d_out), dtype=jnp.float32) * 0.05
    wk = jax.random.normal(kk, (d_in, d_out), dtype=jnp.float32) * 0.05
    wv = jax.random.normal(kv, (d_in, d_out), dtype=jnp.float32) * 0.05
    wo = jax.random.normal(ko, (d_out, d_out), dtype=jnp.float32) * 0.05
    bo = jax.random.normal(kb, (d_out,), dtype=jnp.float32) * 0.05

    out = multi_head_attention(x, wq, wk, wv, wo, bo, num_heads=num_heads)
    out = jax.block_until_ready(out)

    ref = reference_mha(x, wq, wk, wv, wo, bo, num_heads=num_heads)
    assert out.shape == (B, T, d_out)
    # bf16 MXU operands (f32 accumulation) vs. a pure-f32 reference.
    assert jnp.allclose(out, ref, atol=2e-2, rtol=2e-2), "mismatch vs reference"


if __name__ == "__main__":
    key = jax.random.PRNGKey(0)
    k1, k2 = jax.random.split(key)

    # Small shapes consistent with the module's forward (single query tile).
    _run_case(k1, B=2, T=8, d_in=32, d_out=32, num_heads=4)
    # Exercise the multi-query-tile path (B=1 -> tq = T // 2, two grid steps).
    _run_case(k2, B=1, T=16, d_in=32, d_out=32, num_heads=4)

    print("KERNEL_OK")
</pallas_src>

<mosaic_0001>
module attributes {stable_mosaic.version = 11 : i64} {
  func.func @qkv_proj_kernel(%arg0: i32, %arg1: i32, %arg2: memref<1x8x32xbf16, #tpu.memory_space<vmem>>, %arg3: memref<32x96xbf16, #tpu.memory_space<vmem>>, %arg4: memref<1x8x96xbf16, #tpu.memory_space<vmem>>) attributes {dimension_semantics = [#tpu.dimension_semantics<parallel>, #tpu.dimension_semantics<parallel>], iteration_bounds = array<i64: 2, 1>, scalar_prefetch = 0 : i64, scratch_operands = 0 : i64, tpu.core_type = #tpu.core_type<tc>, window_params = [{transform_indices = @transform_0, window_bounds = array<i64: 1, 8, 32>}, {pipeline_mode = #tpu.pipeline_mode<synchronous>, transform_indices = @transform_1, window_bounds = array<i64: 32, 96>}, {transform_indices = @transform_2, window_bounds = array<i64: 1, 8, 96>}]} {
    %c0 = arith.constant 0 : index
    %c0_0 = arith.constant 0 : index
    %c0_1 = arith.constant 0 : index
    %0 = vector.load %arg2[%c0, %c0_0, %c0_1] : memref<1x8x32xbf16, #tpu.memory_space<vmem>>, vector<1x8x32xbf16>
    %1 = vector.shape_cast %0 : vector<1x8x32xbf16> to vector<8x32xbf16>
    %c0_2 = arith.constant 0 : index
    %c0_3 = arith.constant 0 : index
    %2 = vector.load %arg3[%c0_2, %c0_3] : memref<32x96xbf16, #tpu.memory_space<vmem>>, vector<32x96xbf16>
    %cst = arith.constant dense<0.000000e+00> : vector<8x96xf32>
    %3 = tpu.matmul %1, %2, %cst {dimension_numbers = #tpu.dot_dimension_numbers<[1], [0], [0], [1], [0, 0, 1, 1], [], []>} : vector<8x32xbf16>, vector<32x96xbf16>, vector<8x96xf32> -> vector<8x96xf32>
    %4 = arith.truncf %3 : vector<8x96xf32> to vector<8x96xbf16>
    %c0_4 = arith.constant 0 : index
    %c0_5 = arith.constant 0 : index
    %c0_6 = arith.constant 0 : index
    %5 = vector.load %arg4[%c0_4, %c0_5, %c0_6] : memref<1x8x96xbf16, #tpu.memory_space<vmem>>, vector<1x8x96xbf16>
    %6 = vector.shape_cast %5 : vector<1x8x96xbf16> to vector<8x96xbf16>
    %7 = vector.shape_cast %4 : vector<8x96xbf16> to vector<1x8x96xbf16>
    tpu.vector_store %arg4[%c0_4, %c0_5, %c0_6], %7 {strides = array<i32>} : memref<1x8x96xbf16, #tpu.memory_space<vmem>>, vector<1x8x96xbf16>,
    return
  }
  func.func @transform_0(%arg0: i32, %arg1: i32) -> (i32, i32, i32) {
    %c0_i32 = arith.constant 0 : i32
    %c0_i32_0 = arith.constant 0 : i32
    return %arg0, %arg1, %c0_i32 : i32, i32, i32
  }
  func.func @transform_1(%arg0: i32, %arg1: i32) -> (i32, i32) {
    %c0_i32 = arith.constant 0 : i32
    %c0_i32_0 = arith.constant 0 : i32
    %c0_i32_1 = arith.constant 0 : i32
    return %c0_i32, %c0_i32_0 : i32, i32
  }
  func.func @transform_2(%arg0: i32, %arg1: i32) -> (i32, i32, i32) {
    %c0_i32 = arith.constant 0 : i32
    %c0_i32_0 = arith.constant 0 : i32
    return %arg0, %arg1, %c0_i32 : i32, i32, i32
  }
}

</mosaic_0001>

<bundles_post_ra>
// kernel: tpu_custom_call.1
= control target key start
LH: loop header
LB: loop body
LE: loop exit
PB: predicated region body
PF: predicated region fallthrough
CT: control target
= control target key end

     0   :  { %7 = vsyncpa [#allocation3], 0  ;;  %s810_s0 = inlined_call_operand.hbm [shape: bf16[2,8,32], index: 0, kind: input, shape index: {}]   ;;  %s811_s1 = inlined_call_operand.hbm [shape: bf16[32,96], index: 1, kind: input, shape index: {}]   ;;  %s812_s2 = inlined_call_operand.hbm [shape: bf16[2,8,96], index: 2, kind: output, shape index: {}]  }
   0x1   :  { %9 = vsyncpa [#allocation3 + $0x1], 0 }
   0x2   :  { %10 = vsyncpa [#allocation6], 0 }
   0x3   :  { %11 = vsyncpa [#allocation4], 0 }
   0x4   :  { %13 = vsyncpa [#allocation4 + $0x1], 0  ;;  %s631_s9 = smov 0   ;;  %s633_s10 = smov 0  }
   0x5   :  { %s635_s11 = smov 0   ;;  %s637_s12 = smov 0  }
   0x6   :  { %s639_s13 = smov 0   ;;  %s641_s14 = smov 0  }
   0x7 LB: > { %s361_s15 = sadd.s32 4294967295, %s607_s14   ;;  %s362_s16 = sadd.s32 4294967294, %s607_s14   ;;  %s607_s14 = sphi %s641_s14, %s19_s14   ;;  %s603_s13 = sphi %s639_s13, %s830_s13   ;;  %s599_s12 = sphi %s637_s12, %s829_s12   ;;  %s595_s11 = sphi %s635_s11, %s828_s11   ;;  %s591_s10 = sphi %s633_s10, %s827_s10   ;;  %s587_s9 = sphi %s631_s9, %s826_s9  }
   0x8   : > { %p53_p0 = scmp.ne.s32.totalorder %s591_s10, %s587_s9  ;;  %p665_p1 = scmp.eq.s32.totalorder %s361_s15, 0 }
   0x9   : > { %p669_p2 = scmp.eq.s32.totalorder %s361_s15, 1  ;;  %p106_p3 = scmp.eq.s32.totalorder %s362_s16, 1 }
   0xa   : > { %p675_p4 = por %p665_p1, %p53_p0  ;;  %p363_p5 = scmp.ge.s32.totalorder %s607_s14, 1 }
   0xb   : > { %p680_p6 = por %p106_p3, %p53_p0  ;;  %p113_p7 = scmp.lt.s32.totalorder %s607_s14, 3 }
   0xc   : > { %s816_s19 = scalar_select %p675_p4, 1, 0 }
   0xd   : > { %s817_s20 = scalar_select %p680_p6, 1, 0 }
   0xe   : > { %p685_p8 = pnand %p363_p5, %p113_p7  ;;  %s609_s22 = smov [#allocation5]  }
   0xf   : > { %s125_s23 = sshll.u32 %s609_s22, 4  ;;  %s31_s25 = sadd.s32 1, %s603_s13  ;;  %s126_s23 = int_to_ptr.vmem [resolvable:$true] %s125_s23 }
  0x10   : > { %p398_p9 = pneg %p685_p8  ;;  %s480_s26 = scalar_lea.vmem %s126_s23, 256 }
  0x11   : > { %p481_p13 = scmp.ne.s32.totalorder %s126_s23, %s480_s26  ;;  %p488_p5 = scmp.lt.s32.totalorder %s126_s23, %s126_s23 }
  0x12   : > { %p694_p11 = pnand %p398_p9, %p665_p1  ;;  %p489_p7 = scmp.lt.s32.totalorder %s480_s26, %s480_s26 }
  0x14   : > { %p471_p12 = pneg %p694_p11  ;;  %p490_p6 = por %p489_p7, %p488_p5 }
  0x16   : > { %p483_p0 = pnand %p481_p13, %p471_p12 }
  0x18   : > { %p484_p3 = pneg %p483_p0 }
  0x1a   : > { %p491_p4 = pnand %p490_p6, %p484_p3 }
  0x1c   : > { %494 = shalt.err (!%p491_p4)
}
  0x1d   : > { %s610_s27 = smov 64   ;;  %s611_s28 = smov 4  }
  0x1e   : > { %401 = dma.hbm_to_vmem [thread:$0]  (!%p694_p11), %s811_s1, 256, %s126_s23, [#allocation6], %s610_s27, %s610_s27, %s611_s28  }
  0x1f   : > { %p33_p6 = scmp.ge.s32.totalorder %s31_s25, 2  ;;  %s40_s3 = sadd.s32 1, %s595_s11 }
  0x20   : > { %p47_p4 = scmp.ne.s32.totalorder %s595_s11, %s591_s10  ;;  %p48_p9 = scmp.eq.s32.totalorder %s607_s14, 0 }
  0x21   : > { %s832_s25 = smov (%p33_p6, %s31_s25), 0  ;;  %p411_p0 = scmp.lt.s32.totalorder %s607_s14, 2 }
  0x22   : > { %p712_p12 = por %p48_p9, %p47_p4  ;;  %p718_p13 = por %p669_p2, %p47_p4 }
  0x23   : > { %s35_s6 = ssub.s32 %s603_s13, %s832_s25  ;;  %s139_s7 = sand.u32 1, %s595_s11  }
  0x24   : > { %p38_p11 = scmp.eq.s32.totalorder %s35_s6, 0  ;;  %s366_s8 = sshll.u32 %s139_s7, 2 }
  0x25   : > { %s367_s16 = sshll.u32 %s603_s13, 6  ;;  %s143_s26 = scalar_lea.vmem [#allocation2], %s366_s8 }
  0x26   : > { %s727_s15 = scalar_select %p38_p11, %s595_s11, %s40_s3  }
  0x27   : > { %s149_s24 = scalar_lea.hbm %s810_s0, %s367_s16  ;;  %s151_s27 = sshll.u32 %s143_s26, 4  ;;  %s152_s27 = int_to_ptr.vmem [resolvable:$true] %s151_s27 }
  0x28   : > { %p735_p2 = pnand %p411_p0, %p712_p12  ;;  %s140_s28 = scalar_lea.sflag [#allocation3], %s139_s7 }
  0x29   : > { %s508_s29 = scalar_lea.vmem %s152_s27, 64  ;;  %s612_s30 = smov [#allocation2]  }
  0x2a   : > { %p497_p3 = pneg %p735_p2  ;;  %p509_p5 = scmp.ne.s32.totalorder %s152_s27, %s508_s29 }
  0x2b   : > { %s513_s3 = sshll.u32 %s612_s30, 4  ;;  %s514_s3 = int_to_ptr.vmem [resolvable:$false] %s513_s3 }
  0x2c   : > { %p511_p7 = pnand %p509_p5, %p497_p3  ;;  %s515_s6 = scalar_lea.vmem %s514_s3, 128 }
  0x2d   : > { %p516_p4 = scmp.lt.s32.totalorder %s152_s27, %s514_s3  ;;  %p517_p9 = scmp.lt.s32.totalorder %s515_s6, %s508_s29 }
  0x2e   : > { %p512_p6 = pneg %p511_p7 }
  0x2f   : > { %p518_p11 = por %p517_p9, %p516_p4 }
  0x31   : > { %p519_p10 = pnand %p518_p11, %p512_p6 }
  0x33   : > { %522 = shalt.err (!%p519_p10)
}
  0x34   : > { %405 = dma.hbm_to_vmem [thread:$0]  (!%p735_p2), %s149_s24, 64, %s152_s27, %s140_s28  }
  0x35   : > { %160 = sbr.rel (%p685_p8) target bundleno = 279 (0x117), region = 28  ;;  %s746_s4 = sand.u32 (!%p685_p8), 1, %s591_s10  }
  0x36   : > { %s369_s7 = sshll.u32 (!%p685_p8), %s746_s4, 2  ;;  %s163_s8 = scalar_lea.sflag (!%p685_p8), [#allocation3], %s746_s4 }
  0x37   : > { %s166_s16 = scalar_lea.vmem (!%p685_p8), [#allocation2], %s369_s7  ;;  %p823_p12 = scmp.ne.s32.totalorder (!%p685_p8), %s816_s19, 0 }
  0x3a   : > { %574 = dma.done.wait (%p823_p12), %s163_s8, 64  }
  0x3b   : > { %576 = vsyncadd (%p823_p12), %s163_s8, 4294967232 }
  0x3c   : > { %578 = dma.done.wait (%p665_p1), [#allocation6], 256  }
  0x3d   : > { %580 = vsyncadd (%p665_p1), [#allocation6], 4294967040  ;;  %v613_v0 = vmov 0.0   ;;  %vm614_vm0 = vmmov 0   ;;  %v467_v1 = vld [vmem:[#allocation5 + $0x8] sm:$0xff]   ;;  %v468_v2 = vld [vmem:[#allocation5] sm:$0xff]  }
  0x3e   : > { %382 = vmatprep.subr.bf16.mxu0 %v613_v0  ;;  %386 = vmatprep.mubr.msk.bf16.mxu0 %vm614_vm0, %v613_v0  ;;  %v192_v3 = vld [vmem:[%s166_s16] sm:$0xf]  ;;  %vm209_vm1 = vcmask 261120   ;;  %s376_s19 = sshll.u32 %s599_s12, 6  ;;  %s190_s21 = scalar_lea.vmem [#allocation7], %s369_s7  ;;  %vm254_vm2 = vcmask 781312  }
  0x3f   : > { %383 = vmatpush3.bf16.msra.mxu0 %v467_v1  ;;  %s271_s22 = sshll.u32 %s190_s21, 4  ;;  %s762_s24 = scalar_lea.hbm %s812_s2, %s376_s19  ;;  %s764_s22 = int_to_ptr.vmem [resolvable:$true] %s271_s22 }
  0x40   : > { %384 = vmatprep.subr.bf16.mxu0 %v613_v0  ;;  %s257_s26 = scalar_lea.sflag [#allocation4], %s746_s4  ;;  %s523_s12 = scalar_lea.vmem %s764_s22, 64 }
  0x41   : > { %p524_p1 = scmp.ne.s32.totalorder %s764_s22, %s523_s12  ;;  %s615_s27 = smov [#allocation7]  }
  0x42   : > { %s527_s18 = sshll.u32 %s615_s27, 4  ;;  %s528_s18 = int_to_ptr.vmem [resolvable:$false] %s527_s18 }
  0x43   : > { %385 = vmatpush3.bf16.msra.mxu0 %v468_v2  ;;  %p525_p8 = pnand %p524_p1, %p718_p13  ;;  %s529_s28 = scalar_lea.vmem %s528_s18, 128 }
  0x44   : > { %p530_p0 = scmp.lt.s32.totalorder %s764_s22, %s528_s18  ;;  %p531_p2 = scmp.lt.s32.totalorder %s529_s28, %s523_s12 }
  0x45   : > { %p526_p10 = pneg %p525_p8 }
  0x46   : > { %387 = vmatmul.mubr.msk.bf16.vlgmr.msra.gmra.mxu0 %vm209_vm1, %v192_v3  ;;  %p532_p3 = por %p531_p2, %p530_p0 }
  0x48   : > { %p533_p5 = pnand %p532_p3, %p526_p10 }
 0x106   : > { %v247_v4 = vpop.f32.mrf.mxu0 }
 0x107   : > { %v253_v5 = vpack.c.bf16 %v247_v4, %v247_v4 }
 0x108   : > { %v388_v6 = vpop.f32.mrf.mxu0 }
 0x109   : > { %255 = vst.msk [vmem:[%s190_s21] sm:$0xf] %vm254_vm2, %v253_v5 }
 0x10a   : > { %v250_v7 = vpop.f32.mrf.mxu0 }
 0x10b   : > { %536 = shalt.err (!%p533_p5)
}
 0x10c   : > { %s537_s29 = scalar_lea.hbm %s762_s24, 64  ;;  %s541_s6 = scalar_lea.hbm %s812_s2, 128 }
 0x10d   : > { %p538_p7 = scmp.ne.s32.totalorder %s762_s24, %s537_s29  ;;  %p542_p9 = scmp.lt.s32.totalorder %s762_s24, %s812_s2 }
 0x10e   : > { %p543_p11 = scmp.lt.s32.totalorder %s541_s6, %s537_s29 }
 0x10f   : > { %p539_p6 = pnand %p538_p7, %p718_p13 }
 0x110   : > { %p544_p12 = por %p543_p11, %p542_p9 }
 0x111   : > { %p540_p4 = pneg %p539_p6 }
 0x113   : > { %p545_p1 = pnand %p544_p12, %p540_p4 }
 0x115   : > { %548 = shalt.err (!%p545_p1)
}
 0x116   : > { %396 = dma.vmem_to_hbm [thread:$0]  (%p718_p13), %s764_s22, 64, %s762_s24, %s257_s26   ;;  %v389_v8 = vpop.f32.mrf.mxu0 }
 0x117 PF: > { %s283_s8 = sand.u32 1, %s587_s9   ;;  %p824_p8 = scmp.ne.s32.totalorder %s817_s20, 0 }
 0x118   : > { %p825_p10 = scmp.ge.s32.totalorder %s607_s14, 2  ;;  %s284_s16 = scalar_lea.sflag [#allocation4], %s283_s8 }
 0x11a   : > { %p407_p0 = pnand %p825_p10, %p824_p8 }
 0x11c   : > { %p408_p2 = pneg %p407_p0 }
 0x11e   : > { %582 = dma.done.wait (%p408_p2), %s284_s16, 64  }
 0x11f   : > { %584 = vsyncadd (%p408_p2), %s284_s16, 4294967232  ;;  %s19_s14 = sadd.s32 1, %s607_s14   ;;  %s826_s9 = smov %s591_s10 }
 0x120   : > { %p16_p3 = scmp.ge.s32.totalorder %s19_s14, 4   ;;  %s827_s10 = smov %s595_s11 }
 0x121   : > { %s828_s11 = smov %s727_s15  ;;  %s829_s12 = smov %s603_s13 }
 0x122   : > { %s830_s13 = smov %s832_s25  ;;  %18 = sbr.rel (!%p16_p3) target bundleno = 7 (0x7), region = 77 }
 0x127   :  { %289 = vsyncpa [#allocation3], 1 }
 0x128   :  { %291 = vsyncpa [#allocation3 + $0x1], 1 }
 0x129   :  { %292 = vsyncpa [#allocation6], 1 }
 0x12a   :  { %293 = vsyncpa [#allocation4], 1 }
 0x12b   :  { %295 = vsyncpa [#allocation4 + $0x1], 1 }

</bundles_post_ra>
